<compile_context>
chip_gen: v7x
topology: tpu7x:2x2x1
jax: 0.10.0
libtpu: 0.0.40
codegen_flags: <defaults>
</compile_context>

<pallas_src>
import jax
import jax.numpy as jnp
from jax.experimental import pallas as pl
from jax.experimental.pallas import tpu as pltpu


def _make_kernel(VC, T, HWs, VW, n_dens_rows, n_seq_rows, n_frames):
    """Fused kernel; static shape/limit info baked in.

    Ref order: tmask, imask, dens_pred, dens_tgt, seq, vel[0..VC-1],
               vel_prev[0..VC-1], out.
    """
    f32 = jnp.float32

    def kernel(*refs):
        tmask_ref, imask_ref, dp_ref, dt_ref, seq_ref = refs[:5]
        vel_refs = refs[5:5 + VC]
        prev_refs = refs[5 + VC:5 + 2 * VC]
        out_ref = refs[-1]

        i = pl.program_id(0)

        # ---- mass conservation: sum over (b,c) rows of (sum_xy(dp - dt))^2 --
        dblk = dp_ref.shape[0]
        dp = dp_ref[...].astype(f32)                         # (Dblk, HWd)
        dt = dt_ref[...].astype(f32)
        md = jnp.sum(dp - dt, axis=-1, keepdims=True)        # fused single row-sum
        drow = jax.lax.broadcasted_iota(jnp.int32, (dblk, 1), 0)
        dvalid = (i * dblk + drow < n_dens_rows).astype(f32)
        mass_p = jnp.sum(md * md * dvalid)

        # ---- continuity: sum |seq[t+1] - seq[t]|, time flattened into lanes -
        if T >= 2:
            sblk, L = seq_ref.shape
            s = seq_ref[...].astype(f32)                     # (Sblk, T*HWs)
            nxt = pltpu.roll(s, L - HWs, axis=1)             # nxt[:, c] = s[:, c+HWs]
            srow = jax.lax.broadcasted_iota(jnp.int32, (sblk, 1), 0)
            svalid = (i * sblk + srow < n_seq_rows).astype(f32)
            cont_p = jnp.sum(jnp.abs(nxt - s) * tmask_ref[...] * svalid)
        else:
            cont_p = f32(0.0)

        # ---- kinetic energy per frame (all channels, dense (Nblk, HWv)) -----
        nblk, hwv = vel_refs[0].shape
        planes = [r[...].astype(f32) for r in vel_refs]      # (Nblk, HWv) each
        ke = planes[0] * planes[0]
        for p in planes[1:]:
            ke = ke + p * p
        ke = 0.5 * ke

        # ---- energy conservation: relu(KE[g] - KE[g-1]) ---------------------
        energy_p = f32(0.0)
        if n_frames >= 2:
            if nblk > 1:
                d_in = ke[1:, :] - ke[:-1, :]                # in-block frame diffs
                r_in = jax.lax.broadcasted_iota(jnp.int32, (nblk - 1, 1), 0)
                m_in = (i * nblk + r_in + 1 < n_frames).astype(f32)
                energy_p = energy_p + jnp.sum(jnp.maximum(d_in, 0.0) * m_in)
            # Block-boundary diff: first frame of this block vs last frame of
            # the previous block (one-row extra read instead of a carry).
            prev = [r[...].astype(f32) for r in prev_refs]   # (1, HWv) each
            ke_b = prev[0] * prev[0]
            for p in prev[1:]:
                ke_b = ke_b + p * p
            ke_b = 0.5 * ke_b
            g0 = i * nblk
            m_bd = jnp.logical_and(g0 >= 1, g0 < n_frames).astype(f32)
            energy_p = energy_p + m_bd * jnp.sum(jnp.maximum(ke[0:1, :] - ke_b, 0.0))

        # ---- divergence (only defined for a 2-channel velocity field) -------
        if VC == 2:
            u, v = planes[0], planes[1]
            du = pltpu.roll(u, hwv - 1, axis=1) - u          # u[., c+1]  - u[., c]
            dv = pltpu.roll(v, hwv - VW, axis=1) - v         # v[., c+W]  - v[., c]
            div = du + dv
            vrow = jax.lax.broadcasted_iota(jnp.int32, (nblk, 1), 0)
            fvalid = (i * nblk + vrow < n_frames).astype(f32)
            div_p = jnp.sum(div * div * imask_ref[...] * fvalid)
        else:
            div_p = f32(0.0)

        # ---- pack the four partial sums into one lane-dense output row ------
        lane = jax.lax.broadcasted_iota(jnp.int32, (1, 1, 128), 2)
        vec = jnp.where(lane == 0, mass_p,
              jnp.where(lane == 1, cont_p,
              jnp.where(lane == 2, energy_p,
              jnp.where(lane == 3, div_p, f32(0.0)))))
        out_ref[...] = vec

    return kernel


def _pick_rows(total_rows, row_bytes, budget_bytes):
    """Largest row-tile roughly fitting `budget_bytes`; second-minor block dim
    is kept a multiple of 8 or equal to the full extent."""
    total_rows = max(int(total_rows), 1)
    rows = int(budget_bytes) // max(int(row_bytes), 1)
    if rows >= total_rows:
        return total_rows
    return min(max(8, (rows // 8) * 8), total_rows)


def physics_regularizer(predictions, targets=None,
                        conservation_weight=1.0,
                        continuity_weight=1.0,
                        energy_weight=0.5):
    """Mirror of PhysicsRegularizer.forward (all four loss terms fused)."""
    dens_p = predictions['density']               # (B, C, H, W)
    dens_t = targets['density']                   # (B, C, H, W)
    seq = predictions['density_sequence']         # (Bs, T, Hs, Ws)
    vel = predictions['velocity']                 # (N, VC, VH, VW)

    B, C, H, W = dens_p.shape
    Bs, T, Hs, Ws = seq.shape
    N, VC, VH, VW = vel.shape
    HWd, HWs, HWv = H * W, Hs * Ws, VH * VW
    DR = B * C                                    # density rows (batch*channel)
    L = T * HWs

    # Lane-dense 2-D views (layout plumbing only, contiguous reshapes).
    dp2 = dens_p.reshape(DR, HWd)
    dt2 = dens_t.reshape(DR, HWd)
    seq2 = seq.reshape(Bs, L)
    planes = [vel[:, c, :, :].reshape(N, HWv) for c in range(VC)]
    planes_prev = [p.reshape(N, 1, HWv) for p in planes]  # 3-D view for 1-frame reads

    # Loop-invariant masks hoisted to the host (tiny constant-index inputs).
    lane_s = jnp.arange(L, dtype=jnp.int32).reshape(1, L)
    tmask = (lane_s < (T - 1) * HWs).astype(jnp.float32)
    lane_v = jnp.arange(HWv, dtype=jnp.int32).reshape(1, HWv)
    imask = (((lane_v % VW) != (VW - 1)) &
             (lane_v < (VH - 1) * VW)).astype(jnp.float32)

    # --- generation-aware VMEM budget and batch-tile sizes -------------------
    try:
        vmem_cap = int(pltpu.get_tpu_info().vmem_capacity_bytes)
    except Exception:
        vmem_cap = 64 * 1024 * 1024               # conservative fallback
    vmem_limit = int(min(vmem_cap * 3 // 4, 96 * 1024 * 1024))  # ~48 MiB v7x, ~96 MiB v5e/v6e
    n_streams = 3 + VC                            # dp, dt, seq + VC velocity planes
    block_budget = max(256 * 1024,
                       min(4 * 1024 * 1024, vmem_limit // (4 * n_streams)))

    Dblk = _pick_rows(DR, HWd * dp2.dtype.itemsize, block_budget)
    Sblk = _pick_rows(Bs, L * seq2.dtype.itemsize, block_budget)
    Nblk = _pick_rows(N, HWv * planes[0].dtype.itemsize, block_budget)

    nb_d = pl.cdiv(DR, Dblk)
    nb_s = pl.cdiv(Bs, Sblk)
    nb_v = pl.cdiv(N, Nblk)
    G = max(nb_d, nb_s, nb_v, 1)

    def clamp2(nb):
        # Clamp the block index so smaller groups never DMA out of bounds;
        # validity is handled by row masks inside the kernel.
        return lambda i: (jnp.minimum(i, nb - 1), 0)

    def prev_map(i):
        f = jnp.minimum(jnp.maximum(i * Nblk - 1, 0), N - 1)
        return (f, 0, 0)

    in_specs = [
        pl.BlockSpec((1, L), lambda i: (0, 0)),            # continuity time mask
        pl.BlockSpec((1, HWv), lambda i: (0, 0)),          # divergence interior mask
        pl.BlockSpec((Dblk, HWd), clamp2(nb_d)),           # density pred
        pl.BlockSpec((Dblk, HWd), clamp2(nb_d)),           # density target
        pl.BlockSpec((Sblk, L), clamp2(nb_s)),             # density sequence
    ]
    in_specs += [pl.BlockSpec((Nblk, HWv), clamp2(nb_v)) for _ in range(VC)]
    in_specs += [pl.BlockSpec((None, 1, HWv), prev_map) for _ in range(VC)]

    out_specs = pl.BlockSpec((1, 1, 128), lambda i: (i, 0, 0))
    out_shape = jax.ShapeDtypeStruct((G, 1, 128), jnp.float32)

    kernel = _make_kernel(VC, T, HWs, VW, DR, Bs, N)

    grid_spec = pltpu.PrefetchScalarGridSpec(
        num_scalar_prefetch=0,
        grid=(G,),
        in_specs=in_specs,
        out_specs=out_specs,
    )

    partials = pl.pallas_call(
        kernel,
        out_shape=out_shape,
        grid_spec=grid_spec,
        compiler_params=pltpu.CompilerParams(
            # No cross-step carries remain -> safe to shard across v7x cores.
            dimension_semantics=("parallel",),
            vmem_limit_bytes=vmem_limit,
        ),
    )(tmask, imask, dp2, dt2, seq2, *planes, *planes_prev)

    sums = jnp.sum(partials, axis=(0, 1))          # (128,) tiny reduction in XLA

    inv_mass = 1.0 / float(DR)
    inv_cont = (1.0 / float(Bs * (T - 1) * HWs)) if T >= 2 else 0.0
    inv_energy = (1.0 / float((N - 1) * HWv)) if N >= 2 else 0.0
    inv_div = (1.0 / float(N * (VH - 1) * (VW - 1))) if (
        VC == 2 and VH >= 2 and VW >= 2) else 0.0

    mass_l = sums[0] * inv_mass
    cont_l = sums[1] * inv_cont
    energy_l = sums[2] * inv_energy
    div_l = sums[3] * inv_div

    total = (conservation_weight * mass_l
             + continuity_weight * cont_l
             + energy_weight * energy_l
             + 0.5 * div_l)
    return {
        'mass_conservation': mass_l,
        'continuity': cont_l,
        'energy_conservation': energy_l,
        'divergence': div_l,
        'total_physics_loss': total,
    }


def _reference(predictions, targets,
               conservation_weight=1.0, continuity_weight=1.0,
               energy_weight=0.5):
    """Pure-JAX reference (mirrors the PyTorch math) for validation."""
    dp, dt = predictions['density'], targets['density']
    mass = jnp.mean((dp.sum(axis=(-2, -1)) - dt.sum(axis=(-2, -1))) ** 2)

    seq = predictions['density_sequence']
    cont = jnp.mean(jnp.abs(seq[:, 1:] - seq[:, :-1]))

    vel = predictions['velocity']
    ke = 0.5 * (vel ** 2).sum(axis=1)
    energy = jnp.mean(jax.nn.relu(ke[1:] - ke[:-1]))

    u, v = vel[:, 0], vel[:, 1]
    du_dx = u[:, :, 1:] - u[:, :, :-1]
    dv_dy = v[:, 1:, :] - v[:, :-1, :]
    mh = min(du_dx.shape[1], dv_dy.shape[1])
    mw = min(du_dx.shape[2], dv_dy.shape[2])
    divg = du_dx[:, :mh, :mw] + dv_dy[:, :mh, :mw]
    div = jnp.mean(divg ** 2)

    total = (conservation_weight * mass + continuity_weight * cont
             + energy_weight * energy + 0.5 * div)
    return {'mass_conservation': mass, 'continuity': cont,
            'energy_conservation': energy, 'divergence': div,
            'total_physics_loss': total}


if __name__ == "__main__":
    key = jax.random.PRNGKey(0)
    k1, k2, k3, k4 = jax.random.split(key, 4)

    B, C, H, W = 2, 4, 16, 16
    T = 8
    N = 2  # batch of velocity fields (frames)

    predictions = {
        'density': jax.random.normal(k1, (B, C, H, W), dtype=jnp.float32),
        'density_sequence': jax.random.normal(k2, (B, T, H, W), dtype=jnp.float32),
        'velocity': jax.random.normal(k3, (N, 2, H, W), dtype=jnp.float32),
    }
    targets = {
        'density': jax.random.normal(k4, (B, C, H, W), dtype=jnp.float32),
    }

    losses = physics_regularizer(predictions, targets)
    losses = jax.tree_util.tree_map(jax.block_until_ready, losses)

    ref = _reference(predictions, targets)
    for k in ref:
        assert jnp.allclose(losses[k], ref[k], rtol=1e-5, atol=1e-5), (
            k, losses[k], ref[k])

    print("KERNEL_OK")
</pallas_src>

<mosaic_0001>
module attributes {stable_mosaic.version = 11 : i64} {
  func.func @kernel(%arg0: i32, %arg1: memref<1x2048xf32, #tpu.memory_space<vmem>>, %arg2: memref<1x256xf32, #tpu.memory_space<vmem>>, %arg3: memref<8x256xf32, #tpu.memory_space<vmem>>, %arg4: memref<8x256xf32, #tpu.memory_space<vmem>>, %arg5: memref<2x2048xf32, #tpu.memory_space<vmem>>, %arg6: memref<2x256xf32, #tpu.memory_space<vmem>>, %arg7: memref<2x256xf32, #tpu.memory_space<vmem>>, %arg8: memref<1x1x256xf32, #tpu.memory_space<vmem>>, %arg9: memref<1x1x256xf32, #tpu.memory_space<vmem>>, %arg10: memref<1x1x128xf32, #tpu.memory_space<vmem>>) attributes {dimension_semantics = [#tpu.dimension_semantics<parallel>], iteration_bounds = array<i64: 1>, scalar_prefetch = 0 : i64, scratch_operands = 0 : i64, tpu.core_type = #tpu.core_type<tc>, window_params = [{pipeline_mode = #tpu.pipeline_mode<synchronous>, transform_indices = @transform_0, window_bounds = array<i64: 1, 2048>}, {pipeline_mode = #tpu.pipeline_mode<synchronous>, transform_indices = @transform_1, window_bounds = array<i64: 1, 256>}, {transform_indices = @transform_2, window_bounds = array<i64: 8, 256>}, {transform_indices = @transform_3, window_bounds = array<i64: 8, 256>}, {transform_indices = @transform_4, window_bounds = array<i64: 2, 2048>}, {transform_indices = @transform_5, window_bounds = array<i64: 2, 256>}, {transform_indices = @transform_6, window_bounds = array<i64: 2, 256>}, {transform_indices = @transform_7, window_bounds = array<i64: 1, 1, 256>}, {transform_indices = @transform_8, window_bounds = array<i64: 1, 1, 256>}, {transform_indices = @transform_9, window_bounds = array<i64: 1, 1, 128>}]} {
    %c0 = arith.constant 0 : index
    %c0_0 = arith.constant 0 : index
    %0 = vector.load %arg3[%c0, %c0_0] : memref<8x256xf32, #tpu.memory_space<vmem>>, vector<8x256xf32>
    %c0_1 = arith.constant 0 : index
    %c0_2 = arith.constant 0 : index
    %1 = vector.load %arg4[%c0_1, %c0_2] : memref<8x256xf32, #tpu.memory_space<vmem>>, vector<8x256xf32>
    %2 = arith.subf %0, %1 : vector<8x256xf32>
    %cst = arith.constant dense<0.000000e+00> : vector<8xf32>
    %3 = vector.multi_reduction <add>, %2, %cst [1] : vector<8x256xf32> to vector<8xf32>
    %4 = vector.shape_cast %3 : vector<8xf32> to vector<8x1xf32>
    %5 = tpu.iota {dimensions = array<i32: 0>} : vector<8x1xi32>
    %c8_i32 = arith.constant 8 : i32
    %6 = arith.muli %arg0, %c8_i32 : i32
    %7 = vector.broadcast %6 : i32 to vector<8x1xi32>
    %8 = arith.addi %7, %5 : vector<8x1xi32>
    %c8_i32_3 = arith.constant 8 : i32
    %9 = vector.broadcast %c8_i32_3 : i32 to vector<8x1xi32>
    %10 = arith.cmpi slt, %8, %9 : vector<8x1xi32>
    %11 = arith.extui %10 : vector<8x1xi1> to vector<8x1xi32>
    %12 = arith.sitofp %11 : vector<8x1xi32> to vector<8x1xf32>
    %13 = arith.mulf %4, %4 : vector<8x1xf32>
    %14 = arith.mulf %13, %12 : vector<8x1xf32>
    %15 = vector.shape_cast %14 : vector<8x1xf32> to vector<1x8x1xf32>
    %cst_4 = arith.constant dense<0.000000e+00> : vector<1xf32>
    %16 = vector.multi_reduction <add>, %15, %cst_4 [1, 2] : vector<1x8x1xf32> to vector<1xf32>
    %17 = vector.shape_cast %16 : vector<1xf32> to vector<1x1x1xf32>
    %18 = vector.extract %17[0, 0, 0] : f32 from vector<1x1x1xf32>
    %c0_5 = arith.constant 0 : index
    %c0_6 = arith.constant 0 : index
    %19 = vector.load %arg5[%c0_5, %c0_6] : memref<2x2048xf32, #tpu.memory_space<vmem>>, vector<2x2048xf32>
    %c1792_i32 = arith.constant 1792 : i32
    %20 = tpu.dynamic_rotate %19 by %c1792_i32 dim 1 : vector<2x2048xf32>, i32 -> vector<2x2048xf32>
    %21 = tpu.iota {dimensions = array<i32: 0>} : vector<2x1xi32>
    %c2_i32 = arith.constant 2 : i32
    %22 = arith.muli %arg0, %c2_i32 : i32
    %23 = vector.broadcast %22 : i32 to vector<2x1xi32>
    %24 = arith.addi %23, %21 : vector<2x1xi32>
    %c2_i32_7 = arith.constant 2 : i32
    %25 = vector.broadcast %c2_i32_7 : i32 to vector<2x1xi32>
    %26 = arith.cmpi slt, %24, %25 : vector<2x1xi32>
    %27 = arith.extui %26 : vector<2x1xi1> to vector<2x1xi32>
    %28 = arith.sitofp %27 : vector<2x1xi32> to vector<2x1xf32>
    %29 = arith.subf %20, %19 : vector<2x2048xf32>
    %30 = math.absf %29 : vector<2x2048xf32>
    %c0_8 = arith.constant 0 : index
    %c0_9 = arith.constant 0 : index
    %31 = vector.load %arg1[%c0_8, %c0_9] : memref<1x2048xf32, #tpu.memory_space<vmem>>, vector<1x2048xf32>
    %32 = vector.broadcast %31 : vector<1x2048xf32> to vector<2x2048xf32>
    %33 = arith.mulf %30, %32 : vector<2x2048xf32>
    %34 = vector.broadcast %28 : vector<2x1xf32> to vector<2x2048xf32>
    %35 = arith.mulf %33, %34 : vector<2x2048xf32>
    %36 = vector.shape_cast %35 : vector<2x2048xf32> to vector<1x2x2048xf32>
    %cst_10 = arith.constant dense<0.000000e+00> : vector<1xf32>
    %37 = vector.multi_reduction <add>, %36, %cst_10 [1, 2] : vector<1x2x2048xf32> to vector<1xf32>
    %38 = vector.shape_cast %37 : vector<1xf32> to vector<1x1x1xf32>
    %39 = vector.extract %38[0, 0, 0] : f32 from vector<1x1x1xf32>
    %c0_11 = arith.constant 0 : index
    %c0_12 = arith.constant 0 : index
    %40 = vector.load %arg6[%c0_11, %c0_12] : memref<2x256xf32, #tpu.memory_space<vmem>>, vector<2x256xf32>
    %c0_13 = arith.constant 0 : index
    %c0_14 = arith.constant 0 : index
    %41 = vector.load %arg7[%c0_13, %c0_14] : memref<2x256xf32, #tpu.memory_space<vmem>>, vector<2x256xf32>
    %42 = arith.mulf %40, %40 : vector<2x256xf32>
    %43 = arith.mulf %41, %41 : vector<2x256xf32>
    %44 = arith.addf %42, %43 : vector<2x256xf32>
    %cst_15 = arith.constant 5.000000e-01 : f32
    %45 = vector.broadcast %cst_15 : f32 to vector<2x256xf32>
    %46 = arith.mulf %45, %44 : vector<2x256xf32>
    %47 = vector.extract_strided_slice %46 {offsets = [1, 0], sizes = [1, 256], strides = [1, 1]} : vector<2x256xf32> to vector<1x256xf32>
    %48 = vector.extract_strided_slice %46 {offsets = [0, 0], sizes = [1, 256], strides = [1, 1]} : vector<2x256xf32> to vector<1x256xf32>
    %49 = arith.subf %47, %48 : vector<1x256xf32>
    %50 = tpu.iota {dimensions = array<i32: 0>} : vector<1x1xi32>
    %c2_i32_16 = arith.constant 2 : i32
    %51 = arith.muli %arg0, %c2_i32_16 : i32
    %52 = vector.broadcast %51 : i32 to vector<1x1xi32>
    %53 = arith.addi %52, %50 : vector<1x1xi32>
    %c1_i32 = arith.constant 1 : i32
    %54 = vector.broadcast %c1_i32 : i32 to vector<1x1xi32>
    %55 = arith.addi %53, %54 : vector<1x1xi32>
    %c2_i32_17 = arith.constant 2 : i32
    %56 = vector.broadcast %c2_i32_17 : i32 to vector<1x1xi32>
    %57 = arith.cmpi slt, %55, %56 : vector<1x1xi32>
    %58 = arith.extui %57 : vector<1x1xi1> to vector<1x1xi32>
    %59 = arith.sitofp %58 : vector<1x1xi32> to vector<1x1xf32>
    %cst_18 = arith.constant 0.000000e+00 : f32
    %60 = vector.broadcast %cst_18 : f32 to vector<1x256xf32>
    %61 = arith.maximumf %49, %60 : vector<1x256xf32>
    %62 = vector.broadcast %59 : vector<1x1xf32> to vector<1x256xf32>
    %63 = arith.mulf %61, %62 : vector<1x256xf32>
    %64 = vector.shape_cast %63 : vector<1x256xf32> to vector<1x1x256xf32>
    %cst_19 = arith.constant dense<0.000000e+00> : vector<1xf32>
    %65 = vector.multi_reduction <add>, %64, %cst_19 [1, 2] : vector<1x1x256xf32> to vector<1xf32>
    %66 = vector.shape_cast %65 : vector<1xf32> to vector<1x1x1xf32>
    %67 = vector.extract %66[0, 0, 0] : f32 from vector<1x1x1xf32>
    %cst_20 = arith.constant 0.000000e+00 : f32
    %68 = arith.addf %cst_20, %67 : f32
    %c0_21 = arith.constant 0 : index
    %c0_22 = arith.constant 0 : index
    %c0_23 = arith.constant 0 : index
    %69 = vector.load %arg8[%c0_21, %c0_22, %c0_23] : memref<1x1x256xf32, #tpu.memory_space<vmem>>, vector<1x1x256xf32>
    %70 = vector.shape_cast %69 : vector<1x1x256xf32> to vector<1x256xf32>
    %c0_24 = arith.constant 0 : index
    %c0_25 = arith.constant 0 : index
    %c0_26 = arith.constant 0 : index
    %71 = vector.load %arg9[%c0_24, %c0_25, %c0_26] : memref<1x1x256xf32, #tpu.memory_space<vmem>>, vector<1x1x256xf32>
    %72 = vector.shape_cast %71 : vector<1x1x256xf32> to vector<1x256xf32>
    %73 = arith.mulf %70, %70 : vector<1x256xf32>
    %74 = arith.mulf %72, %72 : vector<1x256xf32>
    %75 = arith.addf %73, %74 : vector<1x256xf32>
    %cst_27 = arith.constant 5.000000e-01 : f32
    %76 = vector.broadcast %cst_27 : f32 to vector<1x256xf32>
    %77 = arith.mulf %76, %75 : vector<1x256xf32>
    %c2_i32_28 = arith.constant 2 : i32
    %78 = arith.muli %arg0, %c2_i32_28 : i32
    %c1_i32_29 = arith.constant 1 : i32
    %79 = arith.cmpi sge, %78, %c1_i32_29 : i32
    %c2_i32_30 = arith.constant 2 : i32
    %80 = arith.cmpi slt, %78, %c2_i32_30 : i32
    %81 = arith.andi %79, %80 : i1
    %82 = arith.extui %81 : i1 to i32
    %83 = arith.sitofp %82 : i32 to f32
    %84 = vector.extract_strided_slice %46 {offsets = [0, 0], sizes = [1, 256], strides = [1, 1]} : vector<2x256xf32> to vector<1x256xf32>
    %85 = arith.subf %84, %77 : vector<1x256xf32>
    %cst_31 = arith.constant 0.000000e+00 : f32
    %86 = vector.broadcast %cst_31 : f32 to vector<1x256xf32>
    %87 = arith.maximumf %85, %86 : vector<1x256xf32>
    %88 = vector.shape_cast %87 : vector<1x256xf32> to vector<1x1x256xf32>
    %cst_32 = arith.constant dense<0.000000e+00> : vector<1xf32>
    %89 = vector.multi_reduction <add>, %88, %cst_32 [1, 2] : vector<1x1x256xf32> to vector<1xf32>
    %90 = vector.shape_cast %89 : vector<1xf32> to vector<1x1x1xf32>
    %91 = vector.extract %90[0, 0, 0] : f32 from vector<1x1x1xf32>
    %92 = arith.mulf %83, %91 : f32
    %93 = arith.addf %68, %92 : f32
    %c255_i32 = arith.constant 255 : i32
    %94 = tpu.dynamic_rotate %40 by %c255_i32 dim 1 : vector<2x256xf32>, i32 -> vector<2x256xf32>
    %95 = arith.subf %94, %40 : vector<2x256xf32>
    %c240_i32 = arith.constant 240 : i32
    %96 = tpu.dynamic_rotate %41 by %c240_i32 dim 1 : vector<2x256xf32>, i32 -> vector<2x256xf32>
    %97 = arith.subf %96, %41 : vector<2x256xf32>
    %98 = arith.addf %95, %97 : vector<2x256xf32>
    %99 = tpu.iota {dimensions = array<i32: 0>} : vector<2x1xi32>
    %c2_i32_33 = arith.constant 2 : i32
    %100 = arith.muli %arg0, %c2_i32_33 : i32
    %101 = vector.broadcast %100 : i32 to vector<2x1xi32>
    %102 = arith.addi %101, %99 : vector<2x1xi32>
    %c2_i32_34 = arith.constant 2 : i32
    %103 = vector.broadcast %c2_i32_34 : i32 to vector<2x1xi32>
    %104 = arith.cmpi slt, %102, %103 : vector<2x1xi32>
    %105 = arith.extui %104 : vector<2x1xi1> to vector<2x1xi32>
    %106 = arith.sitofp %105 : vector<2x1xi32> to vector<2x1xf32>
    %107 = arith.mulf %98, %98 : vector<2x256xf32>
    %c0_35 = arith.constant 0 : index
    %c0_36 = arith.constant 0 : index
    %108 = vector.load %arg2[%c0_35, %c0_36] : memref<1x256xf32, #tpu.memory_space<vmem>>, vector<1x256xf32>
    %109 = vector.broadcast %108 : vector<1x256xf32> to vector<2x256xf32>
    %110 = arith.mulf %107, %109 : vector<2x256xf32>
    %111 = vector.broadcast %106 : vector<2x1xf32> to vector<2x256xf32>
    %112 = arith.mulf %110, %111 : vector<2x256xf32>
    %113 = vector.shape_cast %112 : vector<2x256xf32> to vector<1x2x256xf32>
    %cst_37 = arith.constant dense<0.000000e+00> : vector<1xf32>
    %114 = vector.multi_reduction <add>, %113, %cst_37 [1, 2] : vector<1x2x256xf32> to vector<1xf32>
    %115 = vector.shape_cast %114 : vector<1xf32> to vector<1x1x1xf32>
    %116 = vector.extract %115[0, 0, 0] : f32 from vector<1x1x1xf32>
    %117 = tpu.iota {dimensions = array<i32: 2>} : vector<1x1x128xi32>
    %c0_i32 = arith.constant 0 : i32
    %118 = vector.broadcast %c0_i32 : i32 to vector<1x1x128xi32>
    %119 = arith.cmpi eq, %117, %118 : vector<1x1x128xi32>
    %c1_i32_38 = arith.constant 1 : i32
    %120 = vector.broadcast %c1_i32_38 : i32 to vector<1x1x128xi32>
    %121 = arith.cmpi eq, %117, %120 : vector<1x1x128xi32>
    %c2_i32_39 = arith.constant 2 : i32
    %122 = vector.broadcast %c2_i32_39 : i32 to vector<1x1x128xi32>
    %123 = arith.cmpi eq, %117, %122 : vector<1x1x128xi32>
    %c3_i32 = arith.constant 3 : i32
    %124 = vector.broadcast %c3_i32 : i32 to vector<1x1x128xi32>
    %125 = arith.cmpi eq, %117, %124 : vector<1x1x128xi32>
    %cst_40 = arith.constant 0.000000e+00 : f32
    %126 = vector.broadcast %116 : f32 to vector<1x1x128xf32>
    %127 = vector.broadcast %cst_40 : f32 to vector<1x1x128xf32>
    %128 = arith.select %125, %126, %127 : vector<1x1x128xi1>, vector<1x1x128xf32>
    %129 = vector.broadcast %93 : f32 to vector<1x1x128xf32>
    %130 = arith.select %123, %129, %128 : vector<1x1x128xi1>, vector<1x1x128xf32>
    %131 = vector.broadcast %39 : f32 to vector<1x1x128xf32>
    %132 = arith.select %121, %131, %130 : vector<1x1x128xi1>, vector<1x1x128xf32>
    %133 = vector.broadcast %18 : f32 to vector<1x1x128xf32>
    %134 = arith.select %119, %133, %132 : vector<1x1x128xi1>, vector<1x1x128xf32>
    %c0_41 = arith.constant 0 : index
    %c0_42 = arith.constant 0 : index
    %c0_43 = arith.constant 0 : index
    %135 = vector.load %arg10[%c0_41, %c0_42, %c0_43] : memref<1x1x128xf32, #tpu.memory_space<vmem>>, vector<1x1x128xf32>
    tpu.vector_store %arg10[%c0_41, %c0_42, %c0_43], %134 {strides = array<i32>} : memref<1x1x128xf32, #tpu.memory_space<vmem>>, vector<1x1x128xf32>,
    return
  }
  func.func @transform_0(%arg0: i32) -> (i32, i32) {
    %c0_i32 = arith.constant 0 : i32
    %c0_i32_0 = arith.constant 0 : i32
    %c0_i32_1 = arith.constant 0 : i32
    return %c0_i32, %c0_i32_0 : i32, i32
  }
  func.func @transform_1(%arg0: i32) -> (i32, i32) {
    %c0_i32 = arith.constant 0 : i32
    %c0_i32_0 = arith.constant 0 : i32
    %c0_i32_1 = arith.constant 0 : i32
    return %c0_i32, %c0_i32_0 : i32, i32
  }
  func.func @transform_2(%arg0: i32) -> (i32, i32) {
    %c0_i32 = arith.constant 0 : i32
    %0 = arith.minsi %arg0, %c0_i32 : i32
    %c0_i32_0 = arith.constant 0 : i32
    %c0_i32_1 = arith.constant 0 : i32
    return %0, %c0_i32_0 : i32, i32
  }
  func.func @transform_3(%arg0: i32) -> (i32, i32) {
    %c0_i32 = arith.constant 0 : i32
    %0 = arith.minsi %arg0, %c0_i32 : i32
    %c0_i32_0 = arith.constant 0 : i32
    %c0_i32_1 = arith.constant 0 : i32
    return %0, %c0_i32_0 : i32, i32
  }
  func.func @transform_4(%arg0: i32) -> (i32, i32) {
    %c0_i32 = arith.constant 0 : i32
    %0 = arith.minsi %arg0, %c0_i32 : i32
    %c0_i32_0 = arith.constant 0 : i32
    %c0_i32_1 = arith.constant 0 : i32
    return %0, %c0_i32_0 : i32, i32
  }
  func.func @transform_5(%arg0: i32) -> (i32, i32) {
    %c0_i32 = arith.constant 0 : i32
    %0 = arith.minsi %arg0, %c0_i32 : i32
    %c0_i32_0 = arith.constant 0 : i32
    %c0_i32_1 = arith.constant 0 : i32
    return %0, %c0_i32_0 : i32, i32
  }
  func.func @transform_6(%arg0: i32) -> (i32, i32) {
    %c0_i32 = arith.constant 0 : i32
    %0 = arith.minsi %arg0, %c0_i32 : i32
    %c0_i32_0 = arith.constant 0 : i32
    %c0_i32_1 = arith.constant 0 : i32
    return %0, %c0_i32_0 : i32, i32
  }
  func.func @transform_7(%arg0: i32) -> (i32, i32, i32) {
    %c2_i32 = arith.constant 2 : i32
    %0 = arith.muli %arg0, %c2_i32 : i32
    %c1_i32 = arith.constant 1 : i32
    %1 = arith.subi %0, %c1_i32 : i32
    %c0_i32 = arith.constant 0 : i32
    %2 = arith.maxsi %1, %c0_i32 : i32
    %c1_i32_0 = arith.constant 1 : i32
    %3 = arith.minsi %2, %c1_i32_0 : i32
    %c0_i32_1 = arith.constant 0 : i32
    %c0_i32_2 = arith.constant 0 : i32
    %c0_i32_3 = arith.constant 0 : i32
    return %3, %c0_i32_1, %c0_i32_2 : i32, i32, i32
  }
  func.func @transform_8(%arg0: i32) -> (i32, i32, i32) {
    %c2_i32 = arith.constant 2 : i32
    %0 = arith.muli %arg0, %c2_i32 : i32
    %c1_i32 = arith.constant 1 : i32
    %1 = arith.subi %0, %c1_i32 : i32
    %c0_i32 = arith.constant 0 : i32
    %2 = arith.maxsi %1, %c0_i32 : i32
    %c1_i32_0 = arith.constant 1 : i32
    %3 = arith.minsi %2, %c1_i32_0 : i32
    %c0_i32_1 = arith.constant 0 : i32
    %c0_i32_2 = arith.constant 0 : i32
    %c0_i32_3 = arith.constant 0 : i32
    return %3, %c0_i32_1, %c0_i32_2 : i32, i32, i32
  }
  func.func @transform_9(%arg0: i32) -> (i32, i32, i32) {
    %c0_i32 = arith.constant 0 : i32
    %c0_i32_0 = arith.constant 0 : i32
    %c0_i32_1 = arith.constant 0 : i32
    return %arg0, %c0_i32, %c0_i32_0 : i32, i32, i32
  }
}

</mosaic_0001>

<bundles_post_ra>
// kernel: tpu_custom_call.1
= control target key start
LH: loop header
LB: loop body
LE: loop exit
PB: predicated region body
PF: predicated region fallthrough
CT: control target
= control target key end

     0   :  { %14 = vsyncpa [#allocation3], 0  ;;  %s1152_s0 = inlined_call_operand.hbm [shape: f32[1,2048], index: 0, kind: input, shape index: {}]   ;;  %s1153_s1 = inlined_call_operand.vmem [shape: f32[1,256], index: 1, kind: input, shape index: {}]   ;;  %s1154_s2 = inlined_call_operand.hbm [shape: f32[8,256], index: 2, kind: input, shape index: {}]   ;;  %s1155_s3 = inlined_call_operand.hbm [shape: f32[8,256], index: 3, kind: input, shape index: {}]   ;;  %s1156_s4 = inlined_call_operand.hbm [shape: f32[2,2048], index: 4, kind: input, shape index: {}]   ;;  %s1157_s5 = inlined_call_operand.vmem [shape: f32[2,256], index: 5, kind: input, shape index: {}]   ;;  %s1158_s6 = inlined_call_operand.vmem [shape: f32[2,256], index: 6, kind: input, shape index: {}]   ;;  %s1159_s7 = inlined_call_operand.vmem [shape: f32[2,1,256], index: 7, kind: input, shape index: {}]   ;;  %s1160_s8 = inlined_call_operand.vmem [shape: f32[2,1,256], index: 8, kind: input, shape index: {}]   ;;  %s1161_s9 = inlined_call_operand.hbm [shape: f32[1,1,128], index: 9, kind: output, shape index: {}]  }
   0x1   :  { %15 = vsyncpa [#allocation6], 0 }
   0x2   :  { %16 = vsyncpa [#allocation9], 0 }
   0x3   :  { %17 = vsyncpa [#allocation4], 0  ;;  %s841_s30 = smov [#allocation5]   ;;  %s842_s11 = smov [#allocation2]  }
   0x4   :  { %s36_s10 = sshll.u32 %s841_s30, 4  ;;  %s24_s12 = sshll.u32 %s842_s11, 4  ;;  %s37_s10 = int_to_ptr.vmem [resolvable:$true] %s36_s10  ;;  %s25_s12 = int_to_ptr.vmem [resolvable:$true] %s24_s12 }
   0x5   :  { %s723_s15 = scalar_lea.hbm %s1154_s2, 256 }
   0x6   :  { %p724_p0 = scmp.ne.s32.totalorder %s1154_s2, %s723_s15  ;;  %p727_p1 = scmp.lt.u32.totalorder %s723_s15, %s1154_s2 }
   0x8   :  { %p729_p2 = pnand %p727_p1, %p724_p0 }
   0xa   :  { %732 = shalt.err (!%p729_p2)
}
   0xb   :  { %s733_s20 = scalar_lea.vmem %s37_s10, 256  ;;  %p738_p4 = scmp.lt.s32.totalorder %s37_s10, %s37_s10 }
   0xc   :  { %p734_p3 = scmp.ne.s32.totalorder %s37_s10, %s733_s20  ;;  %p739_p5 = scmp.lt.s32.totalorder %s733_s20, %s733_s20 }
   0xe   :  { %p740_p6 = por %p739_p5, %p738_p4 }
  0x10   :  { %p741_p7 = pnand %p740_p6, %p734_p3 }
  0x12   :  { %744 = shalt.err (!%p741_p7)
}
  0x13   :  { %39 = dma.hbm_to_vmem [thread:$0]  %s1154_s2, 256, %s37_s10, [#allocation6]  }
  0x14   :  { %s745_s25 = scalar_lea.hbm %s1152_s0, 256 }
  0x15   :  { %p746_p8 = scmp.ne.s32.totalorder %s1152_s0, %s745_s25  ;;  %p749_p9 = scmp.lt.u32.totalorder %s745_s25, %s1152_s0 }
  0x17   :  { %p751_p10 = pnand %p749_p9, %p746_p8 }
  0x19   :  { %754 = shalt.err (!%p751_p10)
}
  0x1a   :  { %s755_s30 = scalar_lea.vmem %s25_s12, 256  ;;  %p760_p12 = scmp.lt.s32.totalorder %s25_s12, %s25_s12 }
  0x1b   :  { %p756_p11 = scmp.ne.s32.totalorder %s25_s12, %s755_s30  ;;  %p761_p13 = scmp.lt.s32.totalorder %s755_s30, %s755_s30 }
  0x1d   :  { %p762_p0 = por %p761_p13, %p760_p12 }
  0x1f   :  { %p763_p1 = pnand %p762_p0, %p756_p11 }
  0x21   :  { %766 = shalt.err (!%p763_p1)
}
  0x22   :  { %27 = dma.hbm_to_vmem [thread:$0]  %s1152_s0, 256, %s25_s12, [#allocation3]  }
  0x23   :  { %s843_s11 = smov [#allocation7]   ;;  %s844_s14 = smov [#allocation8]  }
  0x24   :  { %s46_s13 = sshll.u32 %s843_s11, 4  ;;  %s56_s15 = sshll.u32 %s844_s14, 4  ;;  %s47_s13 = int_to_ptr.vmem [resolvable:$true] %s46_s13  ;;  %s57_s15 = int_to_ptr.vmem [resolvable:$true] %s56_s15 }
  0x25   :  { %s767_s18 = scalar_lea.hbm %s1155_s3, 256 }
  0x26   :  { %p768_p2 = scmp.ne.s32.totalorder %s1155_s3, %s767_s18  ;;  %p771_p3 = scmp.lt.u32.totalorder %s767_s18, %s1155_s3 }
  0x28   :  { %p773_p4 = pnand %p771_p3, %p768_p2 }
  0x2a   :  { %776 = shalt.err (!%p773_p4)
}
  0x2b   :  { %s777_s0 = scalar_lea.vmem %s47_s13, 256  ;;  %p782_p6 = scmp.lt.s32.totalorder %s47_s13, %s47_s13 }
  0x2c   :  { %p778_p5 = scmp.ne.s32.totalorder %s47_s13, %s777_s0  ;;  %p783_p7 = scmp.lt.s32.totalorder %s777_s0, %s777_s0 }
  0x2e   :  { %p784_p8 = por %p783_p7, %p782_p6 }
  0x30   :  { %p785_p9 = pnand %p784_p8, %p778_p5 }
  0x32   :  { %788 = shalt.err (!%p785_p9)
}
  0x33   :  { %49 = dma.hbm_to_vmem [thread:$0]  %s1155_s3, 256, %s47_s13, [#allocation6]  }
  0x34   :  { %s789_s26 = scalar_lea.hbm %s1156_s4, 512 }
  0x35   :  { %p790_p10 = scmp.ne.s32.totalorder %s1156_s4, %s789_s26  ;;  %p793_p11 = scmp.lt.u32.totalorder %s789_s26, %s1156_s4 }
  0x37   :  { %p795_p12 = pnand %p793_p11, %p790_p10 }
  0x39   :  { %798 = shalt.err (!%p795_p12)
}
  0x3a   :  { %s799_s2 = scalar_lea.vmem %s57_s15, 512  ;;  %p804_p0 = scmp.lt.s32.totalorder %s57_s15, %s57_s15 }
  0x3b   :  { %p800_p13 = scmp.ne.s32.totalorder %s57_s15, %s799_s2  ;;  %p805_p1 = scmp.lt.s32.totalorder %s799_s2, %s799_s2 }
  0x3d   :  { %p806_p2 = por %p805_p1, %p804_p0 }
  0x3f   :  { %p807_p3 = pnand %p806_p2, %p800_p13 }
  0x41   :  { %810 = shalt.err (!%p807_p3)
}
  0x42   :  { %59 = dma.hbm_to_vmem [thread:$0]  %s1156_s4, 512, %s57_s15, [#allocation9]  }
  0x43   :  { %833 = dma.done.wait [#allocation3], 256  }
  0x44   :  { %834 = vsyncadd [#allocation3], 4294967040 }
  0x45   :  { %835 = dma.done.wait [#allocation6], 512  }
  0x46   :  { %836 = vsyncadd [#allocation6], 4294966784 }
  0x47   :  { %837 = dma.done.wait [#allocation9], 512  }
  0x48   :  { %838 = vsyncadd [#allocation9], 4294966784  ;;  %v173_v0 = vlaneseq  ;;  %v845_v1 = vmov 1983009808   ;;  %v164_v6 = vld [vmem:[#allocation5] sm:$0xff]  ;;  %v165_v7 = vld [vmem:[#allocation5 + $0x8] sm:$0xff] }
  0x49   :  { %v204_v2 = vunpack.c.l.s4 %v845_v1  ;;  %v166_v8 = vld [vmem:[#allocation7] sm:$0xff]  ;;  %v167_v9 = vld [vmem:[#allocation7 + $0x8] sm:$0xff]  ;;  %s846_s15 = smov 112   ;;  %v847_v20 = vmov 269488144   ;;  %v194_v24 = vld [vmem:[#allocation8] sm:$0xff] }
  0x4a   :  { %v951_v3 = vshrl.u32 %v173_v0, 7  ;;  %v168_v10 = vsub.f32 %v164_v6, %v166_v8  ;;  %v482_v11 = vld [vmem:[%s1158_s6] sm:$0xf]  ;;  %v169_v13 = vsub.f32 %v165_v7, %v167_v9  ;;  %v498_v21 = vunpack.c.l.s4 %v847_v20  ;;  %v195_v31 = vld [vmem:[#allocation8 + $0x8] sm:$0xff]  ;;  %v1003_v50 = vld [vmem:[#allocation8 + $0x18] sm:$0xff]  ;;  %s851_s23 = smov [#allocation10]  }
  0x4b   :  { %v205_v4 = vunpack.c.0.s8 %v204_v2  ;;  %v481_v12 = vld [vmem:[%s1157_s5] sm:$0xf]  ;;  %v484_v16 = vmul.f32 %v482_v11, %v482_v11  ;;  %s848_s5 = smov 127   ;;  %v202_v30 = vcombine.high %v194_v24, %v194_v24  ;;  %v849_v35 = vmov 857870592   ;;  %s673_s24 = sshll.u32 %s851_s23, 4  ;;  %s674_s24 = int_to_ptr.vmem [resolvable:$true] %s673_s24 }
  0x4c   :  { %v483_v15 = vmul.f32 %v481_v12, %v481_v12  ;;  %v170_v18 = vadd.f32 %v169_v13, %v168_v10  ;;  %v491_v23 = vadd.s32 1, %v951_v3  ;;  %v499_v26 = vunpack.c.0.s8 %v498_v21  ;;  %v532_v27 = vld [vmem:[%s1159_s7] sm:$0x3]  ;;  %s811_s25 = scalar_lea.vmem %s674_s24, 16  ;;  %s815_s26 = scalar_lea.vmem %s674_s24, 32 }
  0x4d   :  { %v954_v5 = vsub.s32 %v205_v4, %v951_v3  ;;  %v533_v29 = vld [vmem:[%s1160_s8] sm:$0x3]  ;;  %v534_v33 = vmul.f32 %v532_v27, %v532_v27  ;;  %v546_v36 = vunpack.c.l.s4 %v849_v35  ;;  %v850_v38 = vmov 0.0   ;;  %p812_p4 = scmp.ne.s32.totalorder %s674_s24, %s811_s25  ;;  %p816_p5 = scmp.lt.s32.totalorder %s674_s24, %s674_s24 }
  0x4e   :  { %171 = vadd.xlane.f32.xlu0 %v170_v18  ;;  %v485_v22 = vadd.f32 %v484_v16, %v483_v15  ;;  %vm492_vm0 = vcmp.lt.s32.totalorder %v491_v23, 2  ;;  %v502_v32 = vsub.s32 %v499_v26, %v951_v3  ;;  %v535_v34 = vmul.f32 %v533_v29, %v533_v29  ;;  %v196_v49 = vld [vmem:[#allocation8 + $0x10] sm:$0xff]  ;;  %v1031_v16 = vld [vmem:[#allocation2 + $0x8] sm:$0xff]  ;;  %p817_p6 = scmp.lt.s32.totalorder %s815_s26, %s811_s25 }
  0x4f   :  { %v963_v14 = vrot.slane %v482_v11, %v954_v5  ;;  %v966_v17 = vrot.slane %v481_v12, %v954_v5  ;;  %v697_v39 = vsel %vm492_vm0, 1.0, %v850_v38  ;;  %v216_v40 = vrot.slane %v202_v30, %v954_v5  ;;  %v324_v7 = vld [vmem:[#allocation2] sm:$0xff] }
  0x50   :  { %v983_v28 = vmul.f32 0.5, %v485_v22  ;;  %v993_v41 = vrot.slane %v194_v24, %v954_v5  ;;  %v219_v42 = vcombine.high %v195_v31, %v195_v31  ;;  %v226_v43 = vrot.slane %v195_v31, %v954_v5  ;;  %p818_p7 = por %p817_p6, %p816_p5 }
  0x51   :  { %613 = vrot.lane.b32.xlu1 %v963_v14, %s846_s15  ;;  %v971_v19 = vcombine.high %v966_v17, %v966_v17  ;;  %v978_v25 = vcombine.high %v963_v14, %v963_v14  ;;  %vm289_vm1 = vcmp.lt.s32.totalorder %v951_v3, 2  ;;  %v998_v44 = vsub.s32 1, %v951_v3 }
  0x52   :  { %v488_v37 = vrot.slane %v983_v28, 7  ;;  %v1001_v45 = vsub.s32 3, %v951_v3  ;;  %v503_v46 = vrot.slane %v697_v39, %v502_v32  ;;  %v536_v47 = vadd.f32 %v535_v34, %v534_v33  ;;  %p819_p8 = pnand %p818_p7, %p812_p4 }
  0x53   :  { %v547_v48 = vunpack.c.0.s8 %v546_v36  ;;  %v236_v52 = vcombine.high %v196_v49, %v196_v49  ;;  %v1008_v53 = vcombine.high %v993_v41, %v993_v41  ;;  %v218_v54 = vcombine.high %v216_v40, %v216_v40 }
  0x54   :  { %v490_v51 = vsub.f32 %v983_v28, %v488_v37  ;;  %v1010_v55 = vsel %vm289_vm1, 1.0, %v850_v38  ;;  %v1013_v56 = vsub.s32 0, %v951_v3  ;;  %v233_v57 = vrot.slane %v219_v42, %v954_v5 }
  0x55   :  { %593 = vrot.lane.b32.xlu1 %v971_v19, %s848_s5  ;;  %v234_v58 = vcombine.high %v226_v43, %v226_v43  ;;  %v1017_v59 = vsub.s32 2, %v951_v3  ;;  %v1021_v60 = vrot.slane %v1003_v50, %v954_v5  ;;  %v294_v61 = vsub.f32 %v226_v43, %v216_v40 }
  0x56   :  { %v346_v62 = vsub.s32 4, %v951_v3  ;;  %v504_v63 = vrot.slane %v503_v46, 7  ;;  %v537_v1 = vmul.f32 0.5, %v536_v47  ;;  %v550_v2 = vsub.s32 %v547_v48, %v951_v3 }
  0x57   :  { %v350_v4 = vsub.s32 5, %v951_v3  ;;  %v495_v6 = vmax.f32 %v490_v51, 0.0  ;;  %v250_v8 = vrot.slane %v236_v52, %v954_v5  ;;  %v292_v9 = vsub.f32 %v216_v40, %v993_v41 }
  0x58   :  { %v293_v10 = vsub.f32 %v218_v54, %v1008_v53  ;;  %v235_v11 = vcombine.high %v233_v57, %v233_v57  ;;  %v243_v12 = vrot.slane %v196_v49, %v954_v5  ;;  %v295_v13 = vsub.f32 %v234_v58, %v218_v54 }
  0x59   :  { %615 = vrot.lane.b32.xlu1 %v978_v25, %s846_s15  ;;  %v354_v15 = vsub.s32 6, %v951_v3  ;;  %v302_v18 = vsub.f32 %v1021_v60, %v250_v8  ;;  %v310_v20 = vand.u32 2147483647, %v294_v61  ;;  %v339_v21 = vrot.slane %v324_v7, %v1017_v59 }
  0x5a   :  { %v358_v22 = vsub.s32 7, %v951_v3  ;;  %vm518_vm2 = vcmask 1040384   ;;  %v343_v23 = vrot.slane %v324_v7, %v1001_v45  ;;  %v551_v24 = vrot.slane %v537_v1, %v550_v2 }
  0x5b   :  { %v331_v26 = vrot.slane %v324_v7, %v1013_v56  ;;  %v296_v27 = vsub.f32 %v233_v57, %v226_v43  ;;  %v506_v29 = vmul.f32 %v504_v63, %v495_v6  ;;  %vm440_vm3 = vcmask 1041408  }
  0x5c   :  { %v308_v30 = vand.u32 2147483647, %v292_v9  ;;  %v309_v31 = vand.u32 2147483647, %v293_v10  ;;  %v335_v32 = vrot.slane %v324_v7, %v998_v44  ;;  %v363_v33 = vrot.slane %v1031_v16, %v1013_v56 }
  0x5d   :  { %v251_v34 = vcombine.high %v243_v12, %v243_v12  ;;  %v297_v35 = vsub.f32 %v235_v11, %v234_v58  ;;  %v311_v36 = vand.u32 2147483647, %v295_v13  ;;  %v318_v37 = vand.u32 2147483647, %v302_v18 }
  0x5e   :  { %v371_v38 = vrot.slane %v1031_v16, %v1017_v59  ;;  %v410_v39 = vmul.f32 %v339_v21, %v310_v20  ;;  %v298_v40 = vsub.f32 %v243_v12, %v233_v57  ;;  %v553_v42 = vsub.f32 %v983_v28, %v551_v24 }
  0x5f   :  { %v252_v43 = vcombine.high %v250_v8, %v250_v8  ;;  %v312_v46 = vand.u32 2147483647, %v296_v27  ;;  %v347_v47 = vrot.slane %v324_v7, %v346_v62  ;;  %v511_v48 = vrot.slane %v506_v29, %v998_v44 }
  0x60   :  { %v253_v49 = vcombine.high %v1003_v50, %v1003_v50  ;;  %v408_v51 = vmul.f32 %v331_v26, %v308_v30  ;;  %v409_v52 = vmul.f32 %v335_v32, %v309_v31  ;;  %v299_v54 = vsub.f32 %v251_v34, %v235_v11 }
  0x61   :  { %v313_v58 = vand.u32 2147483647, %v297_v35  ;;  %v351_v61 = vrot.slane %v324_v7, %v350_v4  ;;  %v411_v57 = vmul.f32 %v343_v23, %v311_v36  ;;  %v515_v28 = vrot.slane %v506_v29, %v1001_v45 }
  0x62   :  { %v426_v63 = vmul.f32 %v1010_v55, %v410_v39  ;;  %v300_v1 = vsub.f32 %v250_v8, %v243_v12  ;;  %v314_v2 = vand.u32 2147483647, %v298_v40  ;;  %v355_v6 = vrot.slane %v324_v7, %v354_v15 }
  0x63   :  { %v412_v9 = vmul.f32 %v347_v47, %v312_v46  ;;  %v424_v50 = vmul.f32 %v1010_v55, %v408_v51  ;;  %v425_v10 = vmul.f32 %v1010_v55, %v409_v52  ;;  %v554_v11 = vmax.f32 %v553_v42, 0.0 }
  0x64   :  { %591 = vrot.lane.b32.xlu0 %v966_v17, %s848_s5  ;;  %v267_v13 = vrot.slane %v253_v49, %v954_v5  ;;  %v268_v18 = vcombine.high %v1021_v60, %v1021_v60  ;;  %v301_v20 = vsub.f32 %v252_v43, %v251_v34  ;;  %v315_v21 = vand.u32 2147483647, %v299_v54 }
  0x65   :  { %v359_v8 = vrot.slane %v324_v7, %v358_v22  ;;  %v413_v12 = vmul.f32 %v351_v61, %v313_v58  ;;  %v427_v23 = vmul.f32 %v1010_v55, %v411_v57  ;;  %v519_v24 = vsel %vm518_vm2, %v511_v48, 0.0 }
  0x66   :  { %v520_v26 = vsel %vm518_vm2, %v515_v28, 0.0  ;;  %v444_v27 = vsel %vm440_vm3, %v426_v63, 0.0  ;;  %v316_v29 = vand.u32 2147483647, %v300_v1  ;;  %v414_v30 = vmul.f32 %v355_v6, %v314_v2 }
  0x67   :  { %v428_v5 = vmul.f32 %v1010_v55, %v412_v9  ;;  %v441_v31 = vsel %vm440_vm3, %v424_v50, 0.0  ;;  %v442_v32 = vsel %vm440_vm3, %v425_v10, 0.0  ;;  %v269_v34 = vcombine.high %v267_v13, %v267_v13 }
  0x68   :  { %v303_v35 = vsub.f32 %v268_v18, %v252_v43  ;;  %v317_v7 = vand.u32 2147483647, %v301_v20  ;;  %v443_v36 = vadd.f32 %v442_v32, %v441_v31  ;;  %v367_v39 = vrot.slane %v1031_v16, %v998_v44 }
  0x69   :  { %v415_v40 = vmul.f32 %v359_v8, %v315_v21  ;;  %v429_v42 = vmul.f32 %v1010_v55, %v413_v12  ;;  %v446_v46 = vsel %vm440_vm3, %v427_v23, 0.0  ;;  %v375_v47 = vrot.slane %v1031_v16, %v1001_v45 }
  0x6a   :  { %v559_v48 = vrot.slane %v554_v11, %v1013_v56  ;;  %v563_v49 = vrot.slane %v554_v11, %v1017_v59  ;;  %v445_v51 = vadd.f32 %v444_v27, %v443_v36  ;;  %v304_v43 = vsub.f32 %v267_v13, %v1021_v60 }
  0x6b   :  { %v416_v52 = vmul.f32 %v363_v33, %v316_v29  ;;  %v430_v54 = vmul.f32 %v1010_v55, %v414_v30  ;;  %v448_v58 = vsel %vm440_vm3, %v428_v5, 0.0  ;;  %v521_v61 = vadd.f32 %v520_v26, %v519_v24 }
  0x6c   :  { %v418_v57 = vmul.f32 %v371_v38, %v318_v37  ;;  %v305_v28 = vsub.f32 %v269_v34, %v268_v18  ;;  %v447_v63 = vadd.f32 %v446_v46, %v445_v51  ;;  %v319_v1 = vand.u32 2147483647, %v303_v35 }
  0x6d   :  { %v417_v2 = vmul.f32 %v367_v39, %v317_v7  ;;  %v431_v45 = vmul.f32 %v1010_v55, %v415_v40  ;;  %v450_v6 = vsel %vm440_vm3, %v429_v42, 0.0  ;;  %v566_v59 = vsel %vm518_vm2, %v559_v48, 0.0 }
  0x6e   :  { %v567_v9 = vsel %vm518_vm2, %v563_v49, 0.0  ;;  %v306_v60 = vsub.f32 %v993_v41, %v267_v13  ;;  %v449_v33 = vadd.f32 %v448_v58, %v447_v63  ;;  %v320_v50 = vand.u32 2147483647, %v304_v43 }
  0x6f   :  { %v379_v37 = vrot.slane %v1031_v16, %v346_v62  ;;  %v432_v38 = vmul.f32 %v1010_v55, %v416_v52  ;;  %v452_v10 = vsel %vm440_vm3, %v430_v54, 0.0  ;;  %v307_v11 = vsub.f32 %v1008_v53, %v269_v34 }
  0x70   :  { %v321_v18 = vand.u32 2147483647, %v305_v28  ;;  %v451_v20 = vadd.f32 %v450_v6, %v449_v33  ;;  %v383_v21 = vrot.slane %v1031_v16, %v350_v4  ;;  %v419_v8 = vmul.f32 %v375_v47, %v319_v1 }
  0x71   :  { %v433_v41 = vmul.f32 %v1010_v55, %v417_v2  ;;  %v454_v13 = vsel %vm440_vm3, %v431_v45, 0.0  ;;  %v568_v12 = vadd.f32 %v567_v9, %v566_v59  ;;  %v322_v62 = vand.u32 2147483647, %v306_v60 }
  0x72   :  { %v453_v23 = vadd.f32 %v452_v10, %v451_v20  ;;  %v387_v24 = vrot.slane %v1031_v16, %v354_v15  ;;  %v420_v53 = vmul.f32 %v379_v37, %v320_v50  ;;  %v434_v26 = vmul.f32 %v1010_v55, %v418_v57 }
  0x73   :  { %v456_v27 = vsel %vm440_vm3, %v432_v38, 0.0  ;;  %v323_v29 = vand.u32 2147483647, %v307_v11  ;;  %v391_v30 = vrot.slane %v1031_v16, %v358_v22  ;;  %v421_v5 = vmul.f32 %v383_v21, %v321_v18 }
  0x74   :  { %v455_v4 = vadd.f32 %v454_v13, %v453_v23  ;;  %v435_v31 = vmul.f32 %v1010_v55, %v419_v8  ;;  %v458_v32 = vsel %vm440_vm3, %v433_v41, 0.0  ;;  %v422_v35 = vmul.f32 %v387_v24, %v322_v62 }
  0x75   :  { %v436_v15 = vmul.f32 %v1010_v55, %v420_v53  ;;  %v460_v7 = vsel %vm440_vm3, %v434_v26, 0.0  ;;  %v423_v39 = vmul.f32 %v391_v30, %v323_v29  ;;  %v437_v40 = vmul.f32 %v1010_v55, %v421_v5 }
  0x76   :  { %v457_v34 = vadd.f32 %v456_v27, %v455_v4  ;;  %v462_v3 = vsel %vm440_vm3, %v435_v31, 0.0  ;;  %v438_v16 = vmul.f32 %v1010_v55, %v422_v35  ;;  %v1119_v28 = vand.u32 127, %v173_v0  ;;  %v626_v0 = vld [vmem:[%s1153_s1] sm:$0x3] }
  0x77   :  { %v464_v22 = vsel %vm440_vm3, %v436_v15, 0.0  ;;  %v439_v47 = vmul.f32 %v1010_v55, %v423_v39  ;;  %v466_v48 = vsel %vm440_vm3, %v437_v40, 0.0  ;;  %vm183_vm5 = vcmask 7168  }
  0x78   :  { %v459_v36 = vadd.f32 %v458_v32, %v457_v34  ;;  %v468_v51 = vsel %vm440_vm3, %v438_v16, 0.0  ;;  %vm617_vm4 = vcmp.lt.s32.totalorder %v1119_v28, 112  ;;  %vm597_vm6 = vcmp.lt.s32.totalorder %v1119_v28, 127 }
  0x79   :  { %v470_v52 = vsel %vm440_vm3, %v439_v47, 0.0  ;;  %v631_v20 = vrot.slane %v626_v0, %v1013_v56  ;;  %v635_v21 = vrot.slane %v626_v0, %v998_v44  ;;  %vm657_vm7 = vcmp.eq.s32.totalorder %v1119_v28, 3 }
  0x7a   :  { %v461_v42 = vadd.f32 %v460_v7, %v459_v36  ;;  %vm656_vm8 = vcmp.eq.s32.totalorder %v1119_v28, 2  ;;  %vm655_vm9 = vcmp.eq.s32.totalorder %v1119_v28, 1  ;;  %vm654_vm10 = vcmp.eq.s32.totalorder %v1119_v28, 0 }
  0x7c   :  { %v463_v46 = vadd.f32 %v462_v3, %v461_v42 }
  0x7d   :  { %522 = vadd.xlane.f32.xlu1 %v521_v61 }
  0x7e   :  { %v465_v49 = vadd.f32 %v464_v22, %v463_v46 }
  0x80   :  { %v467_v43 = vadd.f32 %v466_v48, %v465_v49 }
  0x81   :  { %569 = vadd.xlane.f32.xlu1 %v568_v12 }
  0x82   :  { %v469_v54 = vadd.f32 %v468_v51, %v467_v43 }
  0x84   :  { %v471_v58 = vadd.f32 %v470_v52, %v469_v54 }
  0x86   :  { %472 = vadd.xlane.f32.xlu0 %v471_v58 }
  0xc3   :  { %v614_v61 = vpop.permute.xlu1 %613 }
  0xc7   :  { %v594_v57 = vpop.permute.xlu1 %593 }
  0xcb   :  { %v616_v63 = vpop.permute.xlu1 %615 }
  0xcc   :  { %v618_v45 = vsel %vm617_vm4, %v614_v61, %v616_v63  ;;  %v619_v6 = vsel %vm617_vm4, %v616_v63, %v614_v61 }
  0xcd   :  { %v620_v50 = vsub.f32 %v618_v45, %v963_v14  ;;  %v621_v37 = vsub.f32 %v619_v6, %v978_v25 }
  0xdb   :  { %v172_v1 = vpop.xlane.xlu0 %171 }
  0xdc   :  { %v181_v2 = vmul.f32 %v172_v1, %v172_v1 }
  0xde   :  { %v184_v59 = vsel %vm183_vm5, %v181_v2, 0.0 }
  0xdf   :  { %185 = vadd.xlane.f32.xlu1 %v184_v59  ;;  %v592_v9 = vpop.permute.xlu0 %591 }
  0xe0   :  { %v598_v60 = vsel %vm597_vm6, %v592_v9, %v594_v57  ;;  %v599_v33 = vsel %vm597_vm6, %v594_v57, %v592_v9 }
  0xe1   :  { %v600_v38 = vsub.f32 %v598_v60, %v966_v17  ;;  %v601_v10 = vsub.f32 %v599_v33, %v971_v19 }
  0xe3   :  { %v622_v11 = vadd.f32 %v620_v50, %v600_v38  ;;  %v623_v18 = vadd.f32 %v621_v37, %v601_v10 }
  0xe5   :  { %v624_v8 = vmul.f32 %v622_v11, %v622_v11  ;;  %v625_v41 = vmul.f32 %v623_v18, %v623_v18 }
  0xe7   :  { %v638_v13 = vmul.f32 %v631_v20, %v624_v8  ;;  %v639_v12 = vmul.f32 %v635_v21, %v625_v41 }
  0xe9   :  { %v640_v62 = vmul.f32 %v1010_v55, %v638_v13  ;;  %v641_v14 = vmul.f32 %v1010_v55, %v639_v12 }
  0xeb   :  { %v642_v25 = vsel %vm440_vm3, %v640_v62, 0.0  ;;  %v643_v17 = vsel %vm440_vm3, %v641_v14, 0.0 }
  0xec   :  { %v644_v23 = vadd.f32 %v643_v17, %v642_v25 }
  0xee   :  { %645 = vadd.xlane.f32.xlu1 %v644_v23 }
 0x10a   :  { %v523_v19 = vpop.xlane.xlu1 %522 }
 0x10b   :  { %v524_v44 = vrot.slane %v523_v19, 4 }
 0x10d   :  { %v525_v4 = vadd.f32 %v524_v44, %v523_v19 }
 0x10e   :  { %v570_v56 = vpop.xlane.xlu1 %569 }
 0x10f   :  { %v571_v26 = vrot.slane %v570_v56, 4  ;;  %v526_v32 = vrot.slane %v525_v4, 2 }
 0x111   :  { %v572_v29 = vadd.f32 %v571_v26, %v570_v56  ;;  %v527_v36 = vadd.f32 %v526_v32, %v525_v4 }
 0x113   :  { %v473_v24 = vpop.xlane.xlu0 %472  ;;  %v573_v5 = vrot.slane %v572_v29, 2  ;;  %v528_v16 = vrot.slane %v527_v36, 1 }
 0x114   :  { %v474_v53 = vrot.slane %v473_v24, 4 }
 0x115   :  { %v574_v15 = vadd.f32 %v573_v5, %v572_v29  ;;  %v529_v48 = vadd.f32 %v528_v16, %v527_v36 }
 0x116   :  { %v475_v27 = vadd.f32 %v474_v53, %v473_v24 }
 0x117   :  { %v575_v3 = vrot.slane %v574_v15, 1 }
 0x118   :  { %v476_v30 = vrot.slane %v475_v27, 2 }
 0x119   :  { %v576_v47 = vadd.f32 %v575_v3, %v574_v15 }
 0x11a   :  { %v477_v34 = vadd.f32 %v476_v30, %v475_v27 }
 0x11c   :  { %v478_v39 = vrot.slane %v477_v34, 1 }
 0x11e   :  { %v479_v22 = vadd.f32 %v478_v39, %v477_v34 }
 0x16c   :  { %v186_v31 = vpop.xlane.xlu1 %185 }
 0x16d   :  { %v187_v55 = vrot.slane %v186_v31, 4 }
 0x16f   :  { %v188_v35 = vadd.f32 %v187_v55, %v186_v31 }
 0x171   :  { %v189_v7 = vrot.slane %v188_v35, 2 }
 0x173   :  { %v190_v40 = vadd.f32 %v189_v7, %v188_v35 }
 0x175   :  { %v191_v42 = vrot.slane %v190_v40, 1 }
 0x177   :  { %v192_v46 = vadd.f32 %v191_v42, %v190_v40 }
 0x179   :  { %698 = vpush %v192_v46 }
 0x17a   :  { %700 = vpush %v479_v22 }
 0x17b   :  { %702 = vpush %v529_v48  ;;  %v646_v49 = vpop.xlane.xlu1 %645 }
 0x17c   :  { %704 = vpush %v576_v47  ;;  %v647_v51 = vrot.slane %v646_v49, 4 }
 0x17e   :  { %v648_v43 = vadd.f32 %v647_v51, %v646_v49 }
 0x180   :  { %v649_v52 = vrot.slane %v648_v43, 2 }
 0x182   :  { %v650_v54 = vadd.f32 %v649_v52, %v648_v43 }
 0x184   :  { %v651_v58 = vrot.slane %v650_v54, 1 }
 0x186   :  { %v652_v61 = vadd.f32 %v651_v58, %v650_v54 }
 0x188   :  { %706 = vpush %v652_v61 }
 0x1aa   :  { %s699_s1 = spop %698 }
 0x1ab   :  { %s701_s19 = spop %700  ;;  %v664_v6 = vstv %s699_s1 }
 0x1ac   :  { %s703_s20 = spop %702  ;;  %v662_v2 = vstv %s701_s19 }
 0x1ad   :  { %s705_s21 = spop %704 }
 0x1ae   :  { %s578_s22 = smul.f32 0.0, %s705_s21 }
 0x1b0   :  { %s579_s0 = sadd.f32 %s703_s20, %s578_s22 }
 0x1b2   :  { %v660_v63 = vstv %s579_s0 }
 0x1b9   :  { %s707_s12 = spop %706 }
 0x1ba   :  { %v658_v57 = vstv %s707_s12 }
 0x1bb   :  { %v659_v1 = vsel %vm657_vm7, %v658_v57, 0.0 }
 0x1bc   :  { %v661_v45 = vsel %vm656_vm8, %v660_v63, %v659_v1 }
 0x1bd   :  { %v663_v59 = vsel %vm655_vm9, %v662_v2, %v661_v45 }
 0x1be   :  { %v665_v9 = vsel %vm654_vm10, %v664_v6, %v663_v59 }
 0x1bf   :  { %666 = vst [vmem:[#allocation10] sm:$0x1] %v665_v9 }
 0x1c0   :  { %822 = shalt.err (!%p819_p8)
}
 0x1c1   :  { %s823_s29 = scalar_lea.hbm %s1161_s9, 16 }
 0x1c2   :  { %p824_p9 = scmp.ne.s32.totalorder %s1161_s9, %s823_s29  ;;  %p827_p10 = scmp.lt.u32.totalorder %s823_s29, %s1161_s9 }
 0x1c4   :  { %p829_p11 = pnand %p827_p10, %p824_p9 }
 0x1c6   :  { %832 = shalt.err (!%p829_p11)
}
 0x1c7   :  { %676 = dma.vmem_to_hbm [thread:$0]  %s674_s24, 16, %s1161_s9, [#allocation4]  }
 0x1c8   :  { %839 = dma.done.wait [#allocation4], 16  }
 0x1c9   :  { %840 = vsyncadd [#allocation4], 4294967280 }
 0x1ca   :  { %680 = vsyncpa [#allocation3], 1 }
 0x1cb   :  { %681 = vsyncpa [#allocation6], 1 }
 0x1cc   :  { %682 = vsyncpa [#allocation9], 1 }
 0x1cd   :  { %683 = vsyncpa [#allocation4], 1 }

</bundles_post_ra>
